<compile_context>
chip_gen: v6e
topology: v6e:2x2x1
jax: 0.10.0
libtpu: 0.0.40
codegen_flags: <defaults>
</compile_context>

<pallas_src>
import jax
import jax.numpy as jnp
from jax.experimental import pallas as pl
from jax.experimental.pallas import tpu as pltpu


def encode_stats_kernel(x_ref, w1_ref, b1_ref, w2_ref, b2_ref,
                        rho_ref, aw_ref, ab_ref,
                        h_out_ref, shift_out_ref,
                        acc_ref, m_sc, l_sc):
    """Pass 1: accumulate x@w1 over V-tiles + online logsumexp of logits over V."""
    k = pl.program_id(0)

    @pl.when(k == 0)
    def _():
        acc_ref[...] = jnp.zeros_like(acc_ref)
        m_sc[...] = jnp.full_like(m_sc, -jnp.inf)
        l_sc[...] = jnp.zeros_like(l_sc)

    # ---- encode: accumulate x @ w1 over the vocab (contraction) axis ----
    acc_ref[...] += jnp.dot(x_ref[...], w1_ref[...],
                            preferred_element_type=jnp.float32)          # (B, H)

    # ---- decode stats: online per-topic logsumexp over the vocab axis ----
    logits = jnp.dot(aw_ref[...], rho_ref[...],
                     preferred_element_type=jnp.float32) + ab_ref[...]   # (T, vt)
    m_new = jnp.maximum(m_sc[...], jnp.max(logits, axis=1, keepdims=True))
    l_sc[...] = l_sc[...] * jnp.exp(m_sc[...] - m_new) + jnp.sum(
        jnp.exp(logits - m_new), axis=1, keepdims=True)
    m_sc[...] = m_new

    @pl.when(k == pl.num_programs(0) - 1)
    def _():
        h = jnp.maximum(acc_ref[...] + b1_ref[...], 0.0)                 # (B, H)
        h = jnp.dot(h.astype(jnp.bfloat16), w2_ref[...],
                    preferred_element_type=jnp.float32)
        h_out_ref[...] = jnp.maximum(h + b2_ref[...], 0.0)               # (B, T)
        # shift[t] = logsumexp_v(logits[t, :]); exp(logits - shift) == softmax row.
        shift_out_ref[...] = m_sc[...] + jnp.log(l_sc[...])              # (T, 1)


def decode_kernel(rho_ref, aw_ref, ab_ref, h_ref, shift_ref, out_ref):
    """Pass 2: stream rho V-tiles, recompute lane-dense logits, write output tile."""
    logits = jnp.dot(aw_ref[...], rho_ref[...],
                     preferred_element_type=jnp.float32) + ab_ref[...]   # (T, vt)
    beta = jnp.exp(logits - shift_ref[...])   # normalized softmax columns of beta
    out_ref[...] = jnp.dot(h_ref[...], beta,
                           preferred_element_type=jnp.float32)           # (B, vt)


def cluster_dnn_forward(x, params, *, v_tile=None):
    """x: (B, V) float32. params: dict of weights in the layout documented above."""
    B, V = x.shape
    w1 = params["w1"].astype(jnp.bfloat16)
    w2 = params["w2"].astype(jnp.bfloat16)
    rho = params["rho_tv"].astype(jnp.bfloat16)
    aw = params["alpha_wT"].astype(jnp.bfloat16)
    b1, b2, ab = params["b1"], params["b2"], params["alpha_b"]
    xb = x.astype(jnp.bfloat16)

    H = w1.shape[1]
    T = w2.shape[1]
    L = rho.shape[0]

    if v_tile is None:
        v_tile = min(V, 2048)  # 2x-buffered bf16 tiles stay far below scoped VMEM
    assert V % v_tile == 0, "vocab size must be a multiple of the V tile"
    assert v_tile % 128 == 0, "V tile must be lane-aligned (multiple of 128)"
    n_tiles = V // v_tile

    def full(shape):
        return pl.BlockSpec(shape, lambda k: (0,) * len(shape))

    # ---- pass 1: encode accumulation + softmax stats (reduction over V) ----
    h, shift = pl.pallas_call(
        encode_stats_kernel,
        out_shape=(jax.ShapeDtypeStruct((B, T), jnp.float32),
                   jax.ShapeDtypeStruct((T, 1), jnp.float32)),
        grid=(n_tiles,),
        in_specs=[
            pl.BlockSpec((B, v_tile), lambda k: (0, k)),   # x tile
            pl.BlockSpec((v_tile, H), lambda k: (k, 0)),   # w1 tile
            full((1, H)),                                  # b1
            full((H, T)),                                  # w2
            full((1, T)),                                  # b2
            pl.BlockSpec((L, v_tile), lambda k: (0, k)),   # rho^T tile
            full((T, L)),                                  # alpha weight
            full((T, 1)),                                  # alpha bias column
        ],
        out_specs=(full((B, T)), full((T, 1))),
        scratch_shapes=[pltpu.VMEM((B, H), jnp.float32),   # x@w1 accumulator
                        pltpu.VMEM((T, 1), jnp.float32),   # running max
                        pltpu.VMEM((T, 1), jnp.float32)],  # running sum-exp
        compiler_params=pltpu.CompilerParams(
            dimension_semantics=("arbitrary",)),
    )(xb, w1, b1, w2, b2, rho, aw, ab)

    # ---- pass 2: independent output tiles over V (megacore-parallel on v7x) ----
    out = pl.pallas_call(
        decode_kernel,
        out_shape=jax.ShapeDtypeStruct((B, V), jnp.float32),
        grid=(n_tiles,),
        in_specs=[
            pl.BlockSpec((L, v_tile), lambda k: (0, k)),   # rho^T tile
            full((T, L)),                                  # alpha weight
            full((T, 1)),                                  # alpha bias column
            full((B, T)),                                  # h (resident, tiny)
            full((T, 1)),                                  # per-topic logsumexp
        ],
        out_specs=pl.BlockSpec((B, v_tile), lambda k: (0, k)),
        compiler_params=pltpu.CompilerParams(
            dimension_semantics=("parallel",)),
    )(rho, aw, ab, h, shift)
    return out


def make_params(key, encode_dims, latent_dim, topic_size, vocab_size):
    v, hdim, t = encode_dims
    assert v == vocab_size and t == topic_size
    ks = jax.random.split(key, 7)
    s = 0.1
    return {
        "w1": s * jax.random.normal(ks[0], (v, hdim), jnp.float32),
        "b1": s * jax.random.normal(ks[1], (1, hdim), jnp.float32),
        "w2": s * jax.random.normal(ks[2], (hdim, t), jnp.float32),
        "b2": s * jax.random.normal(ks[3], (1, t), jnp.float32),
        "rho_tv": s * jax.random.normal(ks[4], (latent_dim, v), jnp.float32),
        "alpha_wT": s * jax.random.normal(ks[5], (t, latent_dim), jnp.float32),
        "alpha_b": s * jax.random.normal(ks[6], (t, 1), jnp.float32),
    }


def reference_forward(x, p):
    """Pure-JAX reference with the same bf16 weight streaming as the kernel."""
    xb = x.astype(jnp.bfloat16)
    w1 = p["w1"].astype(jnp.bfloat16)
    w2 = p["w2"].astype(jnp.bfloat16)
    rho = p["rho_tv"].astype(jnp.bfloat16)
    aw = p["alpha_wT"].astype(jnp.bfloat16)
    h = jnp.maximum(jnp.dot(xb, w1, preferred_element_type=jnp.float32) + p["b1"], 0.0)
    h = jnp.maximum(jnp.dot(h.astype(jnp.bfloat16), w2,
                            preferred_element_type=jnp.float32) + p["b2"], 0.0)
    logits = jnp.dot(aw, rho, preferred_element_type=jnp.float32) + p["alpha_b"]
    beta = jax.nn.softmax(logits, axis=1)        # == softmax(alpha(rho.w), dim=0).T
    return jnp.dot(h, beta, preferred_element_type=jnp.float32)


if __name__ == "__main__":
    vocab_size = 256
    hidden = 128
    topic_size = 32
    latent_dim = 64
    batch = 8
    encode_dims = [vocab_size, hidden, topic_size]

    key = jax.random.PRNGKey(0)
    kx, kp = jax.random.split(key)
    x = jax.random.uniform(kx, (batch, vocab_size), jnp.float32)
    params = make_params(kp, encode_dims, latent_dim, topic_size, vocab_size)

    # v_tile=128 -> 2 V-tiles per pass at this toy size, exercising the pipeline.
    out = jax.block_until_ready(cluster_dnn_forward(x, params, v_tile=128))
    ref = reference_forward(x, params)

    assert out.shape == (batch, vocab_size)
    assert jnp.allclose(out, ref, atol=1e-3, rtol=1e-2), "mismatch vs JAX reference"
    print("KERNEL_OK")
</pallas_src>

<mosaic_0001>
module attributes {stable_mosaic.version = 11 : i64} {
  func.func @encode_stats_kernel(%arg0: i32, %arg1: memref<8x128xbf16, #tpu.memory_space<vmem>>, %arg2: memref<128x128xbf16, #tpu.memory_space<vmem>>, %arg3: memref<1x128xf32, #tpu.memory_space<vmem>>, %arg4: memref<128x32xbf16, #tpu.memory_space<vmem>>, %arg5: memref<1x32xf32, #tpu.memory_space<vmem>>, %arg6: memref<64x128xbf16, #tpu.memory_space<vmem>>, %arg7: memref<32x64xbf16, #tpu.memory_space<vmem>>, %arg8: memref<32x1xf32, #tpu.memory_space<vmem>>, %arg9: memref<8x32xf32, #tpu.memory_space<vmem>>, %arg10: memref<32x1xf32, #tpu.memory_space<vmem>>, %arg11: memref<8x128xf32, #tpu.memory_space<vmem>>, %arg12: memref<32x1xf32, #tpu.memory_space<vmem>>, %arg13: memref<32x1xf32, #tpu.memory_space<vmem>>) attributes {dimension_semantics = [#tpu.dimension_semantics<arbitrary>], iteration_bounds = array<i64: 2>, scalar_prefetch = 0 : i64, scratch_operands = 3 : i64, tpu.core_type = #tpu.core_type<tc>, window_params = [{transform_indices = @transform_0, window_bounds = array<i64: 8, 128>}, {transform_indices = @transform_1, window_bounds = array<i64: 128, 128>}, {pipeline_mode = #tpu.pipeline_mode<synchronous>, transform_indices = @transform_2, window_bounds = array<i64: 1, 128>}, {pipeline_mode = #tpu.pipeline_mode<synchronous>, transform_indices = @transform_3, window_bounds = array<i64: 128, 32>}, {pipeline_mode = #tpu.pipeline_mode<synchronous>, transform_indices = @transform_4, window_bounds = array<i64: 1, 32>}, {transform_indices = @transform_5, window_bounds = array<i64: 64, 128>}, {pipeline_mode = #tpu.pipeline_mode<synchronous>, transform_indices = @transform_6, window_bounds = array<i64: 32, 64>}, {pipeline_mode = #tpu.pipeline_mode<synchronous>, transform_indices = @transform_7, window_bounds = array<i64: 32, 1>}, {pipeline_mode = #tpu.pipeline_mode<synchronous>, transform_indices = @transform_8, window_bounds = array<i64: 8, 32>}, {pipeline_mode = #tpu.pipeline_mode<synchronous>, transform_indices = @transform_9, window_bounds = array<i64: 32, 1>}]} {
    %c0_i32 = arith.constant 0 : i32
    %0 = arith.cmpi eq, %arg0, %c0_i32 : i32
    %1 = arith.extui %0 : i1 to i32
    %c0_i32_0 = arith.constant 0 : i32
    %2 = arith.cmpi ne, %1, %c0_i32_0 : i32
    scf.if %2 {
      %cst_28 = arith.constant 0.000000e+00 : f32
      %35 = vector.broadcast %cst_28 : f32 to vector<8x128xf32>
      %c0_29 = arith.constant 0 : index
      %c0_30 = arith.constant 0 : index
      %36 = vector.load %arg11[%c0_29, %c0_30] : memref<8x128xf32, #tpu.memory_space<vmem>>, vector<8x128xf32>
      tpu.vector_store %arg11[%c0_29, %c0_30], %35 {strides = array<i32>} : memref<8x128xf32, #tpu.memory_space<vmem>>, vector<8x128xf32>,
      %cst_31 = arith.constant 0xFF800000 : f32
      %37 = vector.broadcast %cst_31 : f32 to vector<32x1xf32>
      %c0_32 = arith.constant 0 : index
      %c0_33 = arith.constant 0 : index
      %38 = vector.load %arg12[%c0_32, %c0_33] : memref<32x1xf32, #tpu.memory_space<vmem>>, vector<32x1xf32>
      tpu.vector_store %arg12[%c0_32, %c0_33], %37 {strides = array<i32>} : memref<32x1xf32, #tpu.memory_space<vmem>>, vector<32x1xf32>,
      %cst_34 = arith.constant 0.000000e+00 : f32
      %39 = vector.broadcast %cst_34 : f32 to vector<32x1xf32>
      %c0_35 = arith.constant 0 : index
      %c0_36 = arith.constant 0 : index
      %40 = vector.load %arg13[%c0_35, %c0_36] : memref<32x1xf32, #tpu.memory_space<vmem>>, vector<32x1xf32>
      tpu.vector_store %arg13[%c0_35, %c0_36], %39 {strides = array<i32>} : memref<32x1xf32, #tpu.memory_space<vmem>>, vector<32x1xf32>,
    } else {
    }
    %c0 = arith.constant 0 : index
    %c0_1 = arith.constant 0 : index
    %3 = vector.load %arg11[%c0, %c0_1] : memref<8x128xf32, #tpu.memory_space<vmem>>, vector<8x128xf32>
    %c0_2 = arith.constant 0 : index
    %c0_3 = arith.constant 0 : index
    %4 = vector.load %arg1[%c0_2, %c0_3] : memref<8x128xbf16, #tpu.memory_space<vmem>>, vector<8x128xbf16>
    %c0_4 = arith.constant 0 : index
    %c0_5 = arith.constant 0 : index
    %5 = vector.load %arg2[%c0_4, %c0_5] : memref<128x128xbf16, #tpu.memory_space<vmem>>, vector<128x128xbf16>
    %cst = arith.constant dense<0.000000e+00> : vector<8x128xf32>
    %6 = tpu.matmul %4, %5, %cst {dimension_numbers = #tpu.dot_dimension_numbers<[1], [0], [0], [1], [0, 0, 1, 1], [], []>} : vector<8x128xbf16>, vector<128x128xbf16>, vector<8x128xf32> -> vector<8x128xf32>
    %7 = arith.addf %3, %6 : vector<8x128xf32>
    %c0_6 = arith.constant 0 : index
    %c0_7 = arith.constant 0 : index
    %8 = vector.load %arg11[%c0_6, %c0_7] : memref<8x128xf32, #tpu.memory_space<vmem>>, vector<8x128xf32>
    tpu.vector_store %arg11[%c0_6, %c0_7], %7 {strides = array<i32>} : memref<8x128xf32, #tpu.memory_space<vmem>>, vector<8x128xf32>,
    %c0_8 = arith.constant 0 : index
    %c0_9 = arith.constant 0 : index
    %9 = vector.load %arg7[%c0_8, %c0_9] : memref<32x64xbf16, #tpu.memory_space<vmem>>, vector<32x64xbf16>
    %c0_10 = arith.constant 0 : index
    %c0_11 = arith.constant 0 : index
    %10 = vector.load %arg6[%c0_10, %c0_11] : memref<64x128xbf16, #tpu.memory_space<vmem>>, vector<64x128xbf16>
    %cst_12 = arith.constant dense<0.000000e+00> : vector<32x128xf32>
    %11 = tpu.matmul %9, %10, %cst_12 {dimension_numbers = #tpu.dot_dimension_numbers<[1], [0], [0], [1], [0, 0, 1, 1], [], []>} : vector<32x64xbf16>, vector<64x128xbf16>, vector<32x128xf32> -> vector<32x128xf32>
    %c0_13 = arith.constant 0 : index
    %c0_14 = arith.constant 0 : index
    %12 = vector.load %arg8[%c0_13, %c0_14] : memref<32x1xf32, #tpu.memory_space<vmem>>, vector<32x1xf32>
    %13 = vector.broadcast %12 : vector<32x1xf32> to vector<32x128xf32>
    %14 = arith.addf %11, %13 : vector<32x128xf32>
    %c0_15 = arith.constant 0 : index
    %c0_16 = arith.constant 0 : index
    %15 = vector.load %arg12[%c0_15, %c0_16] : memref<32x1xf32, #tpu.memory_space<vmem>>, vector<32x1xf32>
    %cst_17 = arith.constant dense<0xFF800000> : vector<32xf32>
    %16 = vector.multi_reduction <maximumf>, %14, %cst_17 [1] : vector<32x128xf32> to vector<32xf32>
    %17 = vector.shape_cast %16 : vector<32xf32> to vector<32x1xf32>
    %18 = arith.maximumf %15, %17 : vector<32x1xf32>
    %c0_18 = arith.constant 0 : index
    %c0_19 = arith.constant 0 : index
    %19 = vector.load %arg13[%c0_18, %c0_19] : memref<32x1xf32, #tpu.memory_space<vmem>>, vector<32x1xf32>
    %c0_20 = arith.constant 0 : index
    %c0_21 = arith.constant 0 : index
    %20 = vector.load %arg12[%c0_20, %c0_21] : memref<32x1xf32, #tpu.memory_space<vmem>>, vector<32x1xf32>
    %21 = arith.subf %20, %18 : vector<32x1xf32>
    %22 = math.exp %21 : vector<32x1xf32>
    %23 = arith.mulf %19, %22 : vector<32x1xf32>
    %24 = vector.broadcast %18 : vector<32x1xf32> to vector<32x128xf32>
    %25 = arith.subf %14, %24 : vector<32x128xf32>
    %26 = math.exp %25 : vector<32x128xf32>
    %cst_22 = arith.constant dense<0.000000e+00> : vector<32xf32>
    %27 = vector.multi_reduction <add>, %26, %cst_22 [1] : vector<32x128xf32> to vector<32xf32>
    %28 = vector.shape_cast %27 : vector<32xf32> to vector<32x1xf32>
    %29 = arith.addf %23, %28 : vector<32x1xf32>
    %c0_23 = arith.constant 0 : index
    %c0_24 = arith.constant 0 : index
    %30 = vector.load %arg13[%c0_23, %c0_24] : memref<32x1xf32, #tpu.memory_space<vmem>>, vector<32x1xf32>
    tpu.vector_store %arg13[%c0_23, %c0_24], %29 {strides = array<i32>} : memref<32x1xf32, #tpu.memory_space<vmem>>, vector<32x1xf32>,
    %c0_25 = arith.constant 0 : index
    %c0_26 = arith.constant 0 : index
    %31 = vector.load %arg12[%c0_25, %c0_26] : memref<32x1xf32, #tpu.memory_space<vmem>>, vector<32x1xf32>
    tpu.vector_store %arg12[%c0_25, %c0_26], %18 {strides = array<i32>} : memref<32x1xf32, #tpu.memory_space<vmem>>, vector<32x1xf32>,
    %c1_i32 = arith.constant 1 : i32
    %32 = arith.cmpi eq, %arg0, %c1_i32 : i32
    %33 = arith.extui %32 : i1 to i32
    %c0_i32_27 = arith.constant 0 : i32
    %34 = arith.cmpi ne, %33, %c0_i32_27 : i32
    scf.if %34 {
      %c0_28 = arith.constant 0 : index
      %c0_29 = arith.constant 0 : index
      %35 = vector.load %arg11[%c0_28, %c0_29] : memref<8x128xf32, #tpu.memory_space<vmem>>, vector<8x128xf32>
      %c0_30 = arith.constant 0 : index
      %c0_31 = arith.constant 0 : index
      %36 = vector.load %arg3[%c0_30, %c0_31] : memref<1x128xf32, #tpu.memory_space<vmem>>, vector<1x128xf32>
      %37 = vector.broadcast %36 : vector<1x128xf32> to vector<8x128xf32>
      %38 = arith.addf %35, %37 : vector<8x128xf32>
      %cst_32 = arith.constant 0.000000e+00 : f32
      %39 = vector.broadcast %cst_32 : f32 to vector<8x128xf32>
      %40 = arith.maximumf %38, %39 : vector<8x128xf32>
      %41 = arith.truncf %40 : vector<8x128xf32> to vector<8x128xbf16>
      %c0_33 = arith.constant 0 : index
      %c0_34 = arith.constant 0 : index
      %42 = vector.load %arg4[%c0_33, %c0_34] : memref<128x32xbf16, #tpu.memory_space<vmem>>, vector<128x32xbf16>
      %cst_35 = arith.constant dense<0.000000e+00> : vector<8x32xf32>
      %43 = tpu.matmul %41, %42, %cst_35 {dimension_numbers = #tpu.dot_dimension_numbers<[1], [0], [0], [1], [0, 0, 1, 1], [], []>} : vector<8x128xbf16>, vector<128x32xbf16>, vector<8x32xf32> -> vector<8x32xf32>
      %c0_36 = arith.constant 0 : index
      %c0_37 = arith.constant 0 : index
      %44 = vector.load %arg5[%c0_36, %c0_37] : memref<1x32xf32, #tpu.memory_space<vmem>>, vector<1x32xf32>
      %45 = vector.broadcast %44 : vector<1x32xf32> to vector<8x32xf32>
      %46 = arith.addf %43, %45 : vector<8x32xf32>
      %cst_38 = arith.constant 0.000000e+00 : f32
      %47 = vector.broadcast %cst_38 : f32 to vector<8x32xf32>
      %48 = arith.maximumf %46, %47 : vector<8x32xf32>
      %c0_39 = arith.constant 0 : index
      %c0_40 = arith.constant 0 : index
      %49 = vector.load %arg9[%c0_39, %c0_40] : memref<8x32xf32, #tpu.memory_space<vmem>>, vector<8x32xf32>
      tpu.vector_store %arg9[%c0_39, %c0_40], %48 {strides = array<i32>} : memref<8x32xf32, #tpu.memory_space<vmem>>, vector<8x32xf32>,
      %c0_41 = arith.constant 0 : index
      %c0_42 = arith.constant 0 : index
      %50 = vector.load %arg12[%c0_41, %c0_42] : memref<32x1xf32, #tpu.memory_space<vmem>>, vector<32x1xf32>
      %c0_43 = arith.constant 0 : index
      %c0_44 = arith.constant 0 : index
      %51 = vector.load %arg13[%c0_43, %c0_44] : memref<32x1xf32, #tpu.memory_space<vmem>>, vector<32x1xf32>
      %52 = math.log %51 : vector<32x1xf32>
      %53 = arith.addf %50, %52 : vector<32x1xf32>
      %c0_45 = arith.constant 0 : index
      %c0_46 = arith.constant 0 : index
      %54 = vector.load %arg10[%c0_45, %c0_46] : memref<32x1xf32, #tpu.memory_space<vmem>>, vector<32x1xf32>
      tpu.vector_store %arg10[%c0_45, %c0_46], %53 {strides = array<i32>} : memref<32x1xf32, #tpu.memory_space<vmem>>, vector<32x1xf32>,
    } else {
    }
    return
  }
  func.func @transform_0(%arg0: i32) -> (i32, i32) {
    %c0_i32 = arith.constant 0 : i32
    %c0_i32_0 = arith.constant 0 : i32
    return %c0_i32, %arg0 : i32, i32
  }
  func.func @transform_1(%arg0: i32) -> (i32, i32) {
    %c0_i32 = arith.constant 0 : i32
    %c0_i32_0 = arith.constant 0 : i32
    return %arg0, %c0_i32 : i32, i32
  }
  func.func @transform_2(%arg0: i32) -> (i32, i32) {
    %c0_i32 = arith.constant 0 : i32
    %c0_i32_0 = arith.constant 0 : i32
    %c0_i32_1 = arith.constant 0 : i32
    return %c0_i32, %c0_i32_0 : i32, i32
  }
  func.func @transform_3(%arg0: i32) -> (i32, i32) {
    %c0_i32 = arith.constant 0 : i32
    %c0_i32_0 = arith.constant 0 : i32
    %c0_i32_1 = arith.constant 0 : i32
    return %c0_i32, %c0_i32_0 : i32, i32
  }
  func.func @transform_4(%arg0: i32) -> (i32, i32) {
    %c0_i32 = arith.constant 0 : i32
    %c0_i32_0 = arith.constant 0 : i32
    %c0_i32_1 = arith.constant 0 : i32
    return %c0_i32, %c0_i32_0 : i32, i32
  }
  func.func @transform_5(%arg0: i32) -> (i32, i32) {
    %c0_i32 = arith.constant 0 : i32
    %c0_i32_0 = arith.constant 0 : i32
    return %c0_i32, %arg0 : i32, i32
  }
  func.func @transform_6(%arg0: i32) -> (i32, i32) {
    %c0_i32 = arith.constant 0 : i32
    %c0_i32_0 = arith.constant 0 : i32
    %c0_i32_1 = arith.constant 0 : i32
    return %c0_i32, %c0_i32_0 : i32, i32
  }
  func.func @transform_7(%arg0: i32) -> (i32, i32) {
    %c0_i32 = arith.constant 0 : i32
    %c0_i32_0 = arith.constant 0 : i32
    %c0_i32_1 = arith.constant 0 : i32
    return %c0_i32, %c0_i32_0 : i32, i32
  }
  func.func @transform_8(%arg0: i32) -> (i32, i32) {
    %c0_i32 = arith.constant 0 : i32
    %c0_i32_0 = arith.constant 0 : i32
    %c0_i32_1 = arith.constant 0 : i32
    return %c0_i32, %c0_i32_0 : i32, i32
  }
  func.func @transform_9(%arg0: i32) -> (i32, i32) {
    %c0_i32 = arith.constant 0 : i32
    %c0_i32_0 = arith.constant 0 : i32
    %c0_i32_1 = arith.constant 0 : i32
    return %c0_i32, %c0_i32_0 : i32, i32
  }
}

</mosaic_0001>

<bundles_post_ra>
// kernel: tpu_custom_call.1
= control target key start
LH: loop header
LB: loop body
LE: loop exit
PB: predicated region body
PF: predicated region fallthrough
CT: control target
= control target key end

     0   :  { %15 = vsyncpa [#allocation6], 0  ;;  %s1628_s0 = inlined_call_operand.vmem [shape: bf16[8,256], index: 0, kind: input, shape index: {}]   ;;  %s1629_s1 = inlined_call_operand.hbm [shape: bf16[256,128], index: 1, kind: input, shape index: {}]   ;;  %s1630_s2 = inlined_call_operand.vmem [shape: f32[1,128], index: 2, kind: input, shape index: {}]   ;;  %s1631_s3 = inlined_call_operand.vmem [shape: bf16[128,32], index: 3, kind: input, shape index: {}]   ;;  %s1632_s4 = inlined_call_operand.vmem [shape: f32[1,32], index: 4, kind: input, shape index: {}]   ;;  %s1633_s5 = inlined_call_operand.vmem [shape: bf16[64,256], index: 5, kind: input, shape index: {}]   ;;  %s1634_s6 = inlined_call_operand.vmem [shape: bf16[32,64], index: 6, kind: input, shape index: {}]   ;;  %s1635_s7 = inlined_call_operand.vmem [shape: f32[32,1], index: 7, kind: input, shape index: {}]   ;;  %s1636_s8 = inlined_call_operand.hbm [shape: f32[8,32], index: 8, kind: output, shape index: {0}]   ;;  %s1637_s9 = inlined_call_operand.vmem [shape: f32[32,1], index: 9, kind: output, shape index: {1}]  }
   0x1   :  { %17 = vsyncpa [#allocation6 + $0x1], 0 }
   0x2   :  { %18 = vsyncpa [#allocation7], 0  ;;  %s1400_s30 = smov 0   ;;  %s1402_s10 = smov 0  }
   0x3   :  { %s1404_s11 = smov 0   ;;  %s1406_s12 = smov 0  }
   0x4 LB: > { %s1419_s13 = sadd.s32 4294967295, %s1337_s12   ;;  %s1422_s14 = sadd.s32 1, %s1337_s12   ;;  %s1337_s12 = sphi %s1406_s12, %s1643_s12   ;;  %s1333_s11 = sphi %s1404_s11, %s1642_s11   ;;  %s1329_s10 = sphi %s1402_s10, %s1641_s10   ;;  %s1325_s30 = sphi %s1400_s30, %s1640_s30  }
   0x5   : > { %s54_s15 = ssub.s32 %s1337_s12, %s1422_s14  ;;  %s57_s16 = sadd.s32 1, %s1333_s11 }
   0x6   : > { %p55_p0 = scmp.eq.s32.totalorder %s54_s15, 0  ;;  %p64_p1 = scmp.ne.s32.totalorder %s1333_s11, %s1329_s10 }
   0x7   : > { %p65_p2 = scmp.eq.s32.totalorder %s1337_s12, 0  ;;  %p70_p3 = scmp.ne.s32.totalorder %s1329_s10, %s1325_s30 }
   0x8   : > { %s1432_s17 = scalar_select %p55_p0, %s1333_s11, %s57_s16  }
   0x9   : > { %p1434_p4 = por %p65_p2, %p64_p1  ;;  %p71_p5 = scmp.eq.s32.totalorder %s1419_s13, 0 }
   0xa   : > { %p1032_p7 = scmp.ge.s32.totalorder %s1337_s12, 2 }
   0xb   : > { %p1439_p6 = por %p71_p5, %p70_p3  ;;  %s1445_s20 = sand.u32 (!%p1032_p7), 1, %s1333_s11  }
   0xc   : > { %278 = sbr.rel (%p1032_p7) target bundleno = 46 (0x2e), region = 36  ;;  %s1074_s21 = sshll.u32 (!%p1032_p7), %s1337_s12, 10 }
   0xd   : > { %s1033_s22 = sshll.u32 (!%p1032_p7), %s1445_s20, 6  ;;  %s1452_s25 = scalar_lea.hbm (!%p1032_p7), %s1629_s1, %s1074_s21 }
   0xe   : > { %s293_s26 = scalar_lea.vmem (!%p1032_p7), [#allocation5], %s1033_s22  ;;  %s290_s28 = scalar_lea.sflag (!%p1032_p7), [#allocation6], %s1445_s20 }
   0xf   : > { %s300_s27 = sshll.u32 (!%p1032_p7), %s293_s26, 4  ;;  %s1249_s29 = scalar_lea.hbm (!%p1032_p7), %s1452_s25, 1024  ;;  %s1454_s27 = int_to_ptr.vmem [resolvable:$true] %s300_s27 }
  0x10   : > { %p1250_p8 = scmp.ne.s32.totalorder (!%p1032_p7), %s1452_s25, %s1249_s29  ;;  %s1253_s16 = scalar_lea.hbm (!%p1032_p7), %s1629_s1, 2048 }
  0x11   : > { %p1254_p11 = scmp.lt.s32.totalorder %s1452_s25, %s1629_s1  ;;  %p1255_p12 = scmp.lt.s32.totalorder %s1253_s16, %s1249_s29 }
  0x12   : > { %p1251_p9 = pnand %p1250_p8, %p1434_p4 }
  0x13   : > { %p1256_p13 = por %p1255_p12, %p1254_p11 }
  0x14   : > { %p1252_p10 = pneg %p1251_p9 }
  0x16   : > { %p1257_p0 = pnand %p1256_p13, %p1252_p10 }
  0x18   : > { %1260 = shalt.err (!%p1257_p0)
}
  0x19   : > { %s1261_s22 = scalar_lea.vmem %s1454_s27, 1024  ;;  %s1339_s24 = smov [#allocation5]  }
  0x1a   : > { %p1262_p1 = scmp.ne.s32.totalorder %s1454_s27, %s1261_s22  ;;  %s1265_s26 = sshll.u32 %s1339_s24, 4  ;;  %s1266_s26 = int_to_ptr.vmem [resolvable:$false] %s1265_s26 }
  0x1b   : > { %s1267_s30 = scalar_lea.vmem %s1266_s26, 2048  ;;  %p1268_p5 = scmp.lt.s32.totalorder %s1454_s27, %s1266_s26 }
  0x1c   : > { %p1263_p2 = pnand %p1262_p1, %p1434_p4  ;;  %p1269_p7 = scmp.lt.s32.totalorder %s1267_s30, %s1261_s22 }
  0x1e   : > { %p1264_p3 = pneg %p1263_p2  ;;  %p1270_p8 = por %p1269_p7, %p1268_p5 }
  0x20   : > { %p1271_p9 = pnand %p1270_p8, %p1264_p3 }
  0x22   : > { %1274 = shalt.err (!%p1271_p9)
}
  0x23   : > { %s1340_s29 = smov 64   ;;  %s1341_s15 = smov 4  }
  0x24   : > { %1151 = dma.hbm_to_vmem [thread:$0]  (%p1434_p4), %s1452_s25, 1024, %s1454_s27, %s290_s28, %s1340_s29, %s1340_s29, %s1341_s15  }
  0x25   : > { %309 = sbr.rel (!%p1434_p4) target bundleno = 46 (0x2e), region = 48  ;;  %s1036_s16 = sshll.u32 (%p1434_p4), %s1445_s20, 5 }
  0x26   : > { %s1037_s23 = sshll.u32 (%p1434_p4), %s1337_s12, 2  ;;  %s313_s26 = scalar_lea.vmem (%p1434_p4), [#allocation8], %s1036_s16 }
  0x27   : > { %s315_s24 = scalar_lea.vmem (%p1434_p4), %s1633_s5, %s1037_s23 }
  0x28   : > { %v332_v0 = vld [vmem:[%s315_s24] sm:$0xf] (%p1434_p4)  ;;  %v334_v1 = vld [vmem:[%s315_s24 + $0x8] sm:$0xf] (%p1434_p4)  ;;  %v336_v2 = vld [vmem:[%s315_s24 + $0x10] sm:$0xf] (%p1434_p4) }
  0x29   : > { %333 = vst [vmem:[%s313_s26] sm:$0xf] (%p1434_p4), %v332_v0  ;;  %335 = vst [vmem:[%s313_s26 + $0x4] sm:$0xf] (%p1434_p4), %v334_v1  ;;  %v338_v3 = vld [vmem:[%s315_s24 + $0x18] sm:$0xf] (%p1434_p4) }
  0x2a   : > { %337 = vst [vmem:[%s313_s26 + $0x8] sm:$0xf] %v336_v2  ;;  %v340_v4 = vld [vmem:[%s315_s24 + $0x20] sm:$0xf]  ;;  %v342_v5 = vld [vmem:[%s315_s24 + $0x28] sm:$0xf] }
  0x2b   : > { %339 = vst [vmem:[%s313_s26 + $0xc] sm:$0xf] %v338_v3  ;;  %341 = vst [vmem:[%s313_s26 + $0x10] sm:$0xf] %v340_v4  ;;  %v344_v6 = vld [vmem:[%s315_s24 + $0x30] sm:$0xf] }
  0x2c   : > { %343 = vst [vmem:[%s313_s26 + $0x14] sm:$0xf] %v342_v5  ;;  %v346_v7 = vld [vmem:[%s315_s24 + $0x38] sm:$0xf]  ;;  %345 = vst [vmem:[%s313_s26 + $0x18] sm:$0xf] %v344_v6 }
  0x2d   : > { %347 = vst [vmem:[%s313_s26 + $0x1c] sm:$0xf] %v346_v7 }
  0x2e PF: > { %p1038_p4 = scmp.ge.s32.totalorder %s1337_s12, 1  ;;  %p386_p10 = scmp.lt.s32.totalorder %s1337_s12, 3 }
  0x30   : > { %p387_p11 = pnand %p1038_p4, %p386_p10 }
  0x31   : > { %s392_s18 = sand.u32 (!%p387_p11), 1, %s1329_s10  }
  0x32   : > { %390 = sbr.rel (%p387_p11) target bundleno = 962 (0x3c2), region = 89  ;;  %s1039_s20 = sshll.u32 (!%p387_p11), %s392_s18, 6 }
  0x33   : > { %s393_s25 = scalar_lea.sflag (!%p387_p11), [#allocation6], %s392_s18  ;;  %s1489_s27 = scalar_lea.vmem (!%p387_p11), [#allocation5], %s1039_s20 }
  0x37   : > { %1316 = dma.done.wait (%p1439_p6), %s393_s25, 1024  }
  0x38   : > { %1318 = vsyncadd (%p1439_p6), %s393_s25, 4294966272  ;;  %s1040_s28 = sshll.u32 %s392_s18, 5  ;;  %p441_p12 = scmp.lt.s32.totalorder %s1419_s13, 1 }
  0x39   : > { %s404_s23 = scalar_lea.vmem [#allocation8], %s1040_s28  ;;  %p1042_p13 = scmp.ne.s32.totalorder %s1419_s13, 0 }
  0x3a   : > { %s442_s30 = scalar_select %p441_p12, %s1419_s13, 1 }
  0x3b   : > { %450 = sbr.rel (%p1042_p13) target bundleno = 70 (0x46), region = 101 }
  0x3c   : > { %s1041_s12 = sshll.u32 %s442_s30, 2 }
  0x3d   : > { %s1500_s16 = scalar_lea.vmem %s1628_s0, %s1041_s12 }
  0x40   : > { %vm452_vm0 = vcmask 7168   ;;  %v1342_v8 = vmov 0.0   ;;  %v1343_v9 = vmov -inf  }
  0x41   : > { %451 = vst [vmem:[#allocation2] sm:$0xff] %v1342_v8  ;;  %453 = vst.msk [vmem:[#allocation3] sm:$0xff] %vm452_vm0, %v1343_v9 }
  0x42   : > { %454 = vst.msk [vmem:[#allocation3 + $0x8] sm:$0xff] %vm452_vm0, %v1343_v9  ;;  %455 = vst.msk [vmem:[#allocation3 + $0x10] sm:$0xff] %vm452_vm0, %v1343_v9 }
  0x43   : > { %456 = vst.msk [vmem:[#allocation3 + $0x18] sm:$0xff] %vm452_vm0, %v1343_v9  ;;  %457 = vst.msk [vmem:[#allocation4] sm:$0xff] %vm452_vm0, %v1342_v8 }
  0x44   : > { %458 = vst.msk [vmem:[#allocation4 + $0x8] sm:$0xff] %vm452_vm0, %v1342_v8  ;;  %459 = vst.msk [vmem:[#allocation4 + $0x10] sm:$0xff] %vm452_vm0, %v1342_v8 }
  0x45   : > { %460 = vst.msk [vmem:[#allocation4 + $0x18] sm:$0xff] %vm452_vm0, %v1342_v8 }
  0x46 PF: > { %v1203_v10 = vld [vmem:[%s404_s23 + $0x18] sm:$0xff]   ;;  %v1204_v11 = vld [vmem:[%s404_s23 + $0x10] sm:$0xff]   ;;  %v1344_v12 = vmov 0   ;;  %v1205_v13 = vld [vmem:[%s404_s23 + $0x8] sm:$0xff]   ;;  %vm639_vm1 = vcmask 523264   ;;  %v1345_v34 = vmov 0.0  }
  0x47   : > { %1119 = vmatprep.subr.bf16.mxu1 %v1203_v10  ;;  %1201 = vset.pattern.permute.xlu0 %v1344_v12  ;;  %v1207_v14 = vld [vmem:[%s1634_s6] sm:$0xff]   ;;  %v1206_v15 = vld [vmem:[%s404_s23] sm:$0xff]   ;;  %v583_v17 = vld [vmem:[%s1635_s7 + $0x10] sm:$0xff]  ;;  %vm1346_vm2 = vmmov 0   ;;  %vm775_vm3 = vcmask 7168   ;;  %p1059_p6 = scmp.ne.s32.totalorder %s1419_s13, 1 }
  0x48   : > { %1120 = vmatpush3.bf16.msra.mxu1 %v1203_v10  ;;  %1202 = vset.pattern.permute.xlu1 %v1344_v12  ;;  %v581_v16 = vld [vmem:[%s1635_s7] sm:$0xff]  ;;  %v582_v18 = vld [vmem:[%s1635_s7 + $0x8] sm:$0xff]  ;;  %v584_v19 = vld [vmem:[%s1635_s7 + $0x18] sm:$0xff] }
  0x49   : > { %1121 = vmatprep.subr.bf16.mxu1 %v1204_v11  ;;  %1127 = vmatprep.mubr.msk.bf16.mxu1 %vm639_vm1, %v1207_v14  ;;  %v1208_v20 = vld [vmem:[%s1634_s6 + $0x8] sm:$0xff]   ;;  %v1209_v33 = vld [vmem:[%s1489_s27 + $0x38] sm:$0xff]   ;;  %v1210_v35 = vld [vmem:[%s1489_s27 + $0x30] sm:$0xff]  }
  0x4a   : > { %587 = vperm.xlu0 %1201, %v581_v16   ;;  %597 = vperm.xlu1 %1202, %v583_v17   ;;  %v1211_v36 = vld [vmem:[%s1489_s27 + $0x28] sm:$0xff]   ;;  %v1212_v37 = vld [vmem:[%s1489_s27 + $0x20] sm:$0xff]   ;;  %v1213_v38 = vld [vmem:[%s1489_s27 + $0x18] sm:$0xff]  }
  0x4b   : > { %1099 = vmatprep.subr.bf16.mxu0 %v1345_v34  ;;  %1115 = vmatprep.mubr.msk.bf16.mxu0 %vm1346_vm2, %v1345_v34  ;;  %v1214_v39 = vld [vmem:[%s1489_s27 + $0x10] sm:$0xff]   ;;  %v1215_v40 = vld [vmem:[%s1489_s27 + $0x8] sm:$0xff]   ;;  %v1216_v41 = vld [vmem:[%s1489_s27] sm:$0xff]  }
  0x4c   : > { %1122 = vmatpush3.bf16.msra.mxu1 %v1204_v11  ;;  %1100 = vmatpush3.bf16.msra.mxu0 %v1209_v33  ;;  %v462_v42 = vld [vmem:[%s1500_s16] sm:$0xf]  ;;  %v695_v43 = vld [vmem:[#allocation3] sm:$0xff]  ;;  %v696_v46 = vld [vmem:[#allocation3 + $0x8] sm:$0xff] }
  0x4d   : > { %1123 = vmatprep.subr.bf16.mxu1 %v1205_v13  ;;  %1101 = vmatprep.subr.bf16.mxu0 %v1345_v34  ;;  %v697_v47 = vld [vmem:[#allocation3 + $0x10] sm:$0xff]  ;;  %v698_v53 = vld [vmem:[#allocation3 + $0x18] sm:$0xff] }
  0x4e   : > { %592 = vperm.xlu0 %1201, %v582_v18   ;;  %602 = vperm.xlu1 %1202, %v584_v19   ;;  %v461_v59 = vld [vmem:[#allocation2] sm:$0xff] }
  0x50   : > { %1124 = vmatpush3.bf16.msra.mxu1 %v1205_v13  ;;  %1102 = vmatpush3.bf16.msra.mxu0 %v1210_v35 }
  0x51   : > { %1125 = vmatprep.subr.bf16.mxu1 %v1206_v15  ;;  %1103 = vmatprep.subr.bf16.mxu0 %v1345_v34 }
  0x54   : > { %1126 = vmatpush3.bf16.msra.mxu1 %v1206_v15  ;;  %1104 = vmatpush3.bf16.msra.mxu0 %v1211_v36 }
  0x55   : > { %1105 = vmatprep.subr.bf16.mxu0 %v1345_v34 }
  0x57   : > { %1128 = vmatmul.mubr.msk.bf16.vlgmr.msra.gmra.mxu1 %vm639_vm1, %v1208_v20 }
  0x58   : > { %1106 = vmatpush3.bf16.msra.mxu0 %v1212_v37 }
  0x59   : > { %1107 = vmatprep.subr.bf16.mxu0 %v1345_v34 }
  0x5c   : > { %1108 = vmatpush3.bf16.msra.mxu0 %v1213_v38 }
  0x5d   : > { %1109 = vmatprep.subr.bf16.mxu0 %v1345_v34 }
  0x60   : > { %1110 = vmatpush3.bf16.msra.mxu0 %v1214_v39 }
  0x61   : > { %1111 = vmatprep.subr.bf16.mxu0 %v1345_v34 }
  0x64   : > { %1112 = vmatpush3.bf16.msra.mxu0 %v1215_v40 }
  0x65   : > { %1113 = vmatprep.subr.bf16.mxu0 %v1345_v34  ;;  %v714_v34 = vld [vmem:[#allocation4 + $0x18] sm:$0xff] }
  0x68   : > { %1114 = vmatpush3.bf16.msra.mxu0 %v1216_v41 }
  0x6b   : > { %1116 = vmatmul.mubr.bf16.vlgmr.msra.gmra.mxu0 %v462_v42 }
  0xc5   : > { %v588_v21 = vpop.permute.xlu0 %587  ;;  %v598_v23 = vpop.permute.xlu1 %597 }
  0xc9   : > { %v593_v27 = vpop.permute.xlu0 %592  ;;  %v603_v31 = vpop.permute.xlu1 %602 }
 0x117   : > { %v1129_v22 = vpop.f32.mrf.mxu1 }
 0x118   : > { %v1526_v29 = vadd.f32 %v1129_v22, %v598_v23  ;;  %v711_v22 = vld [vmem:[#allocation4] sm:$0xff] }
 0x119   : > { %v680_v24 = vpop.f32.mrf.mxu1 }
 0x11a   : > { %v1523_v25 = vadd.f32 %v680_v24, %v588_v21 }
 0x11b   : > { %v1130_v26 = vpop.f32.mrf.mxu1 }
 0x11c   : > { %699 = vmax.xlane.f32.xlu0 %v1523_v25  ;;  %v1532_v32 = vadd.f32 %v1130_v26, %v603_v31  ;;  %v713_v26 = vld [vmem:[#allocation4 + $0x10] sm:$0xff] }
 0x11d   : > { %v683_v28 = vpop.f32.mrf.mxu1 }
 0x11e   : > { %v1528_v30 = vadd.f32 %v683_v28, %v593_v27 }
 0x120   : > { %701 = vmax.xlane.f32.xlu1 %v1528_v30  ;;  %703 = vmax.xlane.f32.xlu0 %v1526_v29 }
 0x124   : > { %705 = vmax.xlane.f32.xlu0 %v1532_v32 }
 0x12b   : > { %v561_v60 = vpop.f32.mrf.mxu0 }
 0x12c   : > { %v567_v61 = vadd.f32 %v561_v60, %v461_v59 }
 0x12d   : > { %v1117_v62 = vpop.f32.mrf.mxu0 }
 0x12e   : > { %568 = vst [vmem:[#allocation2] sm:$0xff] %v567_v61 }
 0x12f   : > { %v564_v63 = vpop.f32.mrf.mxu0 }
 0x131   : > { %v1118_v0 = vpop.f32.mrf.mxu0 }
 0x1a5   : > { %v700_v44 = vpop.xlane.xlu0 %699 }
 0x1a6   : > { %v707_v45 = vmax.f32 %v695_v43, %v700_v44 }
 0x1a8   : > { %v715_v48 = vsub.f32 %v695_v43, %v707_v45  ;;  %780 = vst.msk [vmem:[#allocation3] sm:$0xff] %vm775_vm3, %v707_v45  ;;  %733 = vperm.xlu1 %1202, %v707_v45  }
 0x1a9   : > { %v702_v49 = vpop.xlane.xlu1 %701  ;;  %v704_v50 = vpop.xlane.xlu0 %703 }
 0x1aa   : > { %v708_v51 = vmax.f32 %v696_v46, %v702_v49  ;;  %v709_v52 = vmax.f32 %v697_v47, %v704_v50  ;;  %v719_v17 = vmul.f32 1.442695, %v715_v48 }
 0x1ac   : > { %v716_v54 = vsub.f32 %v696_v46, %v708_v51  ;;  %781 = vst.msk [vmem:[#allocation3 + $0x8] sm:$0xff] %vm775_vm3, %v708_v51  ;;  %v717_v55 = vsub.f32 %v697_v47, %v709_v52  ;;  %782 = vst.msk [vmem:[#allocation3 + $0x10] sm:$0xff] %vm775_vm3, %v709_v52  ;;  %738 = vperm.xlu0 %1201, %v708_v51   ;;  %743 = vperm.xlu1 %1202, %v709_v52  }
 0x1ad   : > { %v706_v56 = vpop.xlane.xlu0 %705 }
 0x1ae   : > { %v710_v57 = vmax.f32 %v698_v53, %v706_v56  ;;  %v723_v18 = vmul.f32 1.442695, %v717_v55  ;;  %v721_v19 = vmul.f32 1.442695, %v716_v54 }
 0x1b0   : > { %v718_v58 = vsub.f32 %v698_v53, %v710_v57  ;;  %783 = vst.msk [vmem:[#allocation3 + $0x18] sm:$0xff] %vm775_vm3, %v710_v57  ;;  %748 = vperm.xlu1 %1202, %v710_v57  }
 0x1b2   : > { %v725_v20 = vmul.f32 1.442695, %v718_v58 }
 0x223   : > { %v734_v1 = vpop.permute.xlu1 %733 }
 0x224   : > { %v751_v2 = vsub.f32 %v1523_v25, %v734_v1 }
 0x226   : > { %v755_v3 = vmul.f32 1.442695, %v751_v2 }
 0x227   : > { %v744_v4 = vpop.permute.xlu1 %743  ;;  %v739_v5 = vpop.permute.xlu0 %738 }
 0x228   : > { %1217 = vpow2.f32 %v755_v3  ;;  %v753_v6 = vsub.f32 %v1526_v29, %v744_v4  ;;  %v752_v7 = vsub.f32 %v1528_v30, %v739_v5  ;;  %v712_v29 = vld [vmem:[#allocation4 + $0x8] sm:$0xff] }
 0x22a   : > { %v759_v8 = vmul.f32 1.442695, %v753_v6  ;;  %v757_v9 = vmul.f32 1.442695, %v752_v7 }
 0x22b   : > { %v749_v10 = vpop.permute.xlu1 %748 }
 0x22c   : > { %1219 = vpow2.f32 %v759_v8  ;;  %v754_v11 = vsub.f32 %v1532_v32, %v749_v10 }
 0x22d   : > { %1221 = vpow2.f32 %v757_v9 }
 0x22e   : > { %v761_v12 = vmul.f32 1.442695, %v754_v11 }
 0x230   : > { %1223 = vpow2.f32 %v761_v12 }
 0x231   : > { %1225 = vpow2.f32 %v719_v17 }
 0x232   : > { %1227 = vpow2.f32 %v723_v18 }
 0x233   : > { %1229 = vpow2.f32 %v721_v19 }
 0x234   : > { %1231 = vpow2.f32 %v725_v20 }
 0x235   : > { %v1218_v13 = vpop.eup %1217 }
 0x236   : > { %763 = vadd.xlane.f32.xlu0 %v1218_v13 }
 0x239   : > { %v1220_v14 = vpop.eup %1219 }
 0x23a   : > { %v1222_v15 = vpop.eup %1221  ;;  %767 = vadd.xlane.f32.xlu0 %v1220_v14 }
 0x23b   : > { %765 = vadd.xlane.f32.xlu1 %v1222_v15 }
 0x23d   : > { %v1224_v16 = vpop.eup %1223 }
 0x23e   : > { %769 = vadd.xlane.f32.xlu0 %v1224_v16  ;;  %v1226_v21 = vpop.eup %1225 }
 0x23f   : > { %v727_v23 = vmul.f32 %v1226_v21, %v711_v22  ;;  %v1228_v24 = vpop.eup %1227 }
 0x240   : > { %v1230_v27 = vpop.eup %1229  ;;  %v729_v30 = vmul.f32 %v1228_v24, %v713_v26 }
 0x241   : > { %v1232_v31 = vpop.eup %1231  ;;  %v728_v32 = vmul.f32 %v1230_v27, %v712_v29 }
 0x242   : > { %v730_v38 = vmul.f32 %v1232_v31, %v714_v34 }
 0x2bf   : > { %v764_v25 = vpop.xlane.xlu0 %763 }
 0x2c0   : > { %v771_v28 = vadd.f32 %v764_v25, %v727_v23 }
 0x2c2   : > { %776 = vst.msk [vmem:[#allocation4] sm:$0xff] %vm775_vm3, %v771_v28 }
 0x2c3   : > { %v768_v33 = vpop.xlane.xlu0 %767 }
 0x2c4   : > { %v766_v35 = vpop.xlane.xlu1 %765  ;;  %v773_v36 = vadd.f32 %v768_v33, %v729_v30 }
 0x2c5   : > { %v772_v37 = vadd.f32 %v766_v35, %v728_v32 }
 0x2c6   : > { %778 = vst.msk [vmem:[#allocation4 + $0x10] sm:$0xff] %vm775_vm3, %v773_v36  ;;  %787 = sbr.rel (%p1059_p6) target bundleno = 947 (0x3b3), region = 105 }
 0x2c7   : > { %777 = vst.msk [vmem:[#allocation4 + $0x8] sm:$0xff] %vm775_vm3, %v772_v37  ;;  %v770_v39 = vpop.xlane.xlu0 %769 }
 0x2c8   : > { %v774_v40 = vadd.f32 %v770_v39, %v730_v38 }
 0x2ca   : > { %779 = vst.msk [vmem:[#allocation4 + $0x18] sm:$0xff] %vm775_vm3, %v774_v40 }
 0x2cb   : > { %v1233_v41 = vld [vmem:[%s1631_s3 + $0x38] sm:$0xff]   ;;  %v1347_v42 = vmov 0.0   ;;  %v1234_v43 = vld [vmem:[%s1631_s3 + $0x30] sm:$0xff]   ;;  %vm1348_vm4 = vmmov 0   ;;  %v1235_v44 = vld [vmem:[%s1631_s3 + $0x28] sm:$0xff]   ;;  %vm911_vm5 = vcmask 261120  }
 0x2cc   : > { %1131 = vmatprep.subr.bf16.mxu0 %v1347_v42  ;;  %1147 = vmatprep.mubr.msk.bf16.mxu0 %vm1348_vm4, %v1347_v42  ;;  %v1236_v45 = vld [vmem:[%s1631_s3 + $0x20] sm:$0xff]   ;;  %v1237_v46 = vld [vmem:[%s1631_s3 + $0x18] sm:$0xff]   ;;  %v1238_v47 = vld [vmem:[%s1631_s3 + $0x10] sm:$0xff]  }
 0x2cd   : > { %1132 = vmatpush3.bf16.msra.mxu0 %v1233_v41  ;;  %v788_v48 = vld [vmem:[#allocation2] sm:$0xff]  ;;  %v1239_v51 = vld [vmem:[%s1631_s3 + $0x8] sm:$0xff]   ;;  %v919_v57 = vld [vmem:[#allocation4 + $0x10] sm:$0xff] }
 0x2ce   : > { %1133 = vmatprep.subr.bf16.mxu0 %v1347_v42  ;;  %v1060_v49 = vld [vmem:[%s1630_s2] ss:$0 sm:$0xff]  ;;  %v917_v55 = vld [vmem:[#allocation4] sm:$0xff]  ;;  %v918_v56 = vld [vmem:[#allocation4 + $0x8] sm:$0xff] }
 0x2cf   : > { %v796_v50 = vadd.f32 %v1060_v49, %v788_v48  ;;  %v1240_v53 = vld [vmem:[%s1631_s3] sm:$0xff]   ;;  %1241 = vlog2.f32 %v917_v55  ;;  %v913_v63 = vld [vmem:[#allocation3] sm:$0xff]  ;;  %v914_v0 = vld [vmem:[#allocation3 + $0x8] sm:$0xff] }
 0x2d0   : > { %1243 = vlog2.f32 %v918_v56  ;;  %v915_v1 = vld [vmem:[#allocation3 + $0x10] sm:$0xff]  ;;  %v916_v4 = vld [vmem:[#allocation3 + $0x18] sm:$0xff] }
 0x2d1   : > { %1134 = vmatpush3.bf16.msra.mxu0 %v1234_v43  ;;  %v797_v52 = vmax.f32 %v796_v50, 0.0  ;;  %v920_v58 = vld [vmem:[#allocation4 + $0x18] sm:$0xff]  ;;  %1245 = vlog2.f32 %v919_v57 }
 0x2d2   : > { %1135 = vmatprep.subr.bf16.mxu0 %v1347_v42  ;;  %1247 = vlog2.f32 %v920_v58  ;;  %v1061_v11 = vld [vmem:[%s1632_s4] ss:$0 sm:$0xff] }
 0x2d3   : > { %v798_v54 = vpack.c.bf16 %v797_v52, %v797_v52 }
 0x2d5   : > { %1136 = vmatpush3.bf16.msra.mxu0 %v1235_v44 }
 0x2d6   : > { %1137 = vmatprep.subr.bf16.mxu0 %v1347_v42 }
 0x2d9   : > { %1138 = vmatpush3.bf16.msra.mxu0 %v1236_v45 }
 0x2da   : > { %1139 = vmatprep.subr.bf16.mxu0 %v1347_v42 }
 0x2dc   : > { %v1242_v59 = vpop.eup %1241 }
 0x2dd   : > { %1140 = vmatpush3.bf16.msra.mxu0 %v1237_v46  ;;  %v1244_v60 = vpop.eup %1243  ;;  %v922_v61 = vmul.f32 0.6931472, %v1242_v59 }
 0x2de   : > { %1141 = vmatprep.subr.bf16.mxu0 %v1347_v42  ;;  %v1246_v62 = vpop.eup %1245  ;;  %v924_v2 = vmul.f32 0.6931472, %v1244_v60 }
 0x2df   : > { %v1248_v3 = vpop.eup %1247  ;;  %v926_v5 = vmul.f32 0.6931472, %v1246_v62  ;;  %v929_v6 = vadd.f32 %v922_v61, %v913_v63 }
 0x2e0   : > { %v928_v7 = vmul.f32 0.6931472, %v1248_v3  ;;  %v930_v8 = vadd.f32 %v924_v2, %v914_v0 }
 0x2e1   : > { %1142 = vmatpush3.bf16.msra.mxu0 %v1238_v47  ;;  %v931_v9 = vadd.f32 %v926_v5, %v915_v1  ;;  %933 = vst.msk [vmem:[%s1637_s9] sm:$0xff] %vm775_vm3, %v929_v6 }
 0x2e2   : > { %1143 = vmatprep.subr.bf16.mxu0 %v1347_v42  ;;  %v932_v10 = vadd.f32 %v928_v7, %v916_v4  ;;  %934 = vst.msk [vmem:[%s1637_s9 + $0x8] sm:$0xff] %vm775_vm3, %v930_v8 }
 0x2e3   : > { %935 = vst.msk [vmem:[%s1637_s9 + $0x10] sm:$0xff] %vm775_vm3, %v931_v9 }
 0x2e4   : > { %936 = vst.msk [vmem:[%s1637_s9 + $0x18] sm:$0xff] %vm775_vm3, %v932_v10 }
 0x2e5   : > { %1144 = vmatpush3.bf16.msra.mxu0 %v1239_v51 }
 0x2e6   : > { %1145 = vmatprep.subr.bf16.mxu0 %v1347_v42 }
 0x2e9   : > { %1146 = vmatpush3.bf16.msra.mxu0 %v1240_v53 }
 0x2ec   : > { %1148 = vmatmul.mubr.bf16.vlgmr.msra.gmra.mxu0 %v798_v54 }
 0x3ac   : > { %v904_v12 = vpop.f32.mrf.mxu0 }
 0x3ad   : > { %v905_v13 = vadd.f32 %v1061_v11, %v904_v12 }
 0x3ae   : > { %v1149_v14 = vpop.f32.mrf.mxu0 }
 0x3af   : > { %v910_v15 = vmax.f32 %v905_v13, 0.0 }
 0x3b0   : > { %v907_v16 = vpop.f32.mrf.mxu0 }
 0x3b1   : > { %912 = vst.msk [vmem:[#allocation9] sm:$0xff] %vm911_vm5, %v910_v15 }
 0x3b2   : > { %v1150_v17 = vpop.f32.mrf.mxu0 }
 0x3b3 PF: > { %p1157_p0 = scmp.eq.s32.totalorder %s1419_s13, 1  ;;  %s1349_s28 = smov [#allocation9]  }
 0x3b4   : > { %s944_s30 = sshll.u32 %s1349_s28, 4  ;;  %s945_s30 = int_to_ptr.vmem [resolvable:$true] %s944_s30 }
 0x3b5   : > { %s1275_s12 = scalar_lea.vmem %s945_s30, 128  ;;  %p1282_p5 = scmp.lt.s32.totalorder %s945_s30, %s945_s30 }
 0x3b6   : > { %p1276_p1 = scmp.ne.s32.totalorder %s945_s30, %s1275_s12  ;;  %p1283_p7 = scmp.lt.s32.totalorder %s1275_s12, %s1275_s12 }
 0x3b8   : > { %p1277_p2 = pnand %p1276_p1, %p1157_p0  ;;  %p1284_p8 = por %p1283_p7, %p1282_p5 }
 0x3ba   : > { %p1278_p3 = pneg %p1277_p2 }
 0x3bc   : > { %p1285_p9 = pnand %p1284_p8, %p1278_p3 }
 0x3be   : > { %1288 = shalt.err (!%p1285_p9)
}
 0x3bf   : > { %1154 = dma.vmem_to_hbm [thread:$0]  (%p1157_p0), %s945_s30, 128, %s1636_s8, [#allocation7]  }
 0x3c0   : > { %1320 = dma.done.wait (%p1157_p0), [#allocation7], 128  }
 0x3c1   : > { %1322 = vsyncadd (%p1157_p0), [#allocation7], 4294967168 }
 0x3c2 PF: > { %p21_p4 = scmp.ge.s32.totalorder %s1422_s14, 4   ;;  %s1640_s30 = smov %s1329_s10 }
 0x3c3   : > { %s1641_s10 = smov %s1333_s11  ;;  %s1642_s11 = smov %s1432_s17 }
 0x3c4   : > { %s1643_s12 = smov %s1422_s14  ;;  %23 = sbr.rel (!%p21_p4) target bundleno = 4 (0x4), region = 157 }
 0x3c9   :  { %963 = vsyncpa [#allocation6], 1 }
 0x3ca   :  { %965 = vsyncpa [#allocation6 + $0x1], 1 }
 0x3cb   :  { %966 = vsyncpa [#allocation7], 1 }
 0x3cc   :  { %968 = vsyncpa [#allocation7 + $0x1], 1 }

</bundles_post_ra>
